<compile_context>
chip_gen: v6e
topology: v6e:2x2x1
jax: 0.10.0
libtpu: 0.0.40
codegen_flags: <defaults>
</compile_context>

<pallas_src>
import jax
import jax.numpy as jnp
from jax import lax
from jax.experimental import pallas as pl
from jax.experimental.pallas import tpu as pltpu


def _masked_ce_kernel(pred_ref, label_ref, vlen_ref, o_ref):
    # pred_ref : (TB, M, V)  logits tile (any float dtype; compute in f32)
    # label_ref: (TB, M)     int32 class ids
    # vlen_ref : (TB, 1)     int32 valid lengths
    # o_ref    : (TB, 1)     f32 per-sequence masked-summed loss
    logits = pred_ref[...].astype(jnp.float32)
    labels = label_ref[...]
    vlens = vlen_ref[...]
    tb, m, v = logits.shape

    # Numerically stable log-sum-exp over the vocab axis (exp/log go to EUP).
    row_max = jnp.max(logits, axis=-1, keepdims=True)                # (TB, M, 1)
    lse = jnp.log(jnp.sum(jnp.exp(logits - row_max), axis=-1)) + row_max[..., 0]

    # Pick the logit at the label via one-hot compare (no TPU gather primitive).
    vocab_iota = lax.broadcasted_iota(jnp.int32, (tb, m, v), 2)
    picked = jnp.sum(
        jnp.where(vocab_iota == labels[..., None], logits, 0.0), axis=-1)

    unweighted = lse - picked                                        # (TB, M)

    # mask_seq semantics: weight = 1 where position < valid_len, else 0.
    pos = lax.broadcasted_iota(jnp.int32, (tb, m), 1)
    weight = (pos < vlens).astype(jnp.float32)                       # (TB, M)

    o_ref[...] = jnp.sum(unweighted * weight, axis=-1, keepdims=True)


def mask_cross_entropy_loss(pred, label, valid_lens, *, tb=None):
    """pred: (N, M, V) logits; label: (N, M) ints; valid_lens: (N,) ints -> (N,) f32."""
    n, m, v = pred.shape
    label = label.astype(jnp.int32)
    vlens = valid_lens.astype(jnp.int32).reshape(n, 1)

    if tb is None:
        # Keep each pred tile ~<= 4 MiB so the 2-deep pipeline (2 buffers) fits
        # comfortably under scoped VMEM on v5e (16 MiB) / v6e (32) / v7x (64 phys).
        budget = 4 * 1024 * 1024
        tb = max(8, budget // max(1, m * v * pred.dtype.itemsize))
        tb = min(tb, 512)
    if n <= tb:
        tb = n                       # one block == full arrays (small/demo batch)
    else:
        tb = max(8, (tb // 8) * 8)   # sublane-aligned batch tile

    out = pl.pallas_call(
        _masked_ce_kernel,
        out_shape=jax.ShapeDtypeStruct((n, 1), jnp.float32),
        grid_spec=pl.GridSpec(
            grid=(pl.cdiv(n, tb),),
            in_specs=[
                pl.BlockSpec((tb, m, v), lambda i: (i, 0, 0)),  # logits (batch-tiled)
                pl.BlockSpec((tb, m), lambda i: (i, 0)),        # labels
                pl.BlockSpec((tb, 1), lambda i: (i, 0)),        # valid lens
            ],
            out_specs=pl.BlockSpec((tb, 1), lambda i: (i, 0)),
        ),
        compiler_params=pltpu.CompilerParams(
            # batch tiles are independent -> shards across v7x's 2 TensorCores
            dimension_semantics=("parallel",),
            vmem_limit_bytes=32 << 20,
        ),
    )(pred, label, vlens)
    return out[:, 0]


if __name__ == "__main__":
    key = jax.random.PRNGKey(0)
    batch, seq, vocab = 2, 8, 32

    kp, kl = jax.random.split(key, 2)
    pred = jax.random.normal(kp, (batch, seq, vocab), dtype=jnp.float32)
    label = jax.random.randint(kl, (batch, seq), 0, vocab, dtype=jnp.int32)
    valid_lens = jnp.array([5, 8], dtype=jnp.int32)

    loss = mask_cross_entropy_loss(pred, label, valid_lens)
    jax.block_until_ready(loss)

    # Plain-JAX reference: nn.CrossEntropyLoss(reduction='none') + mask_seq + sum(dim=1).
    logits = pred.reshape(-1, vocab)
    lse = jax.nn.logsumexp(logits, axis=-1)
    picked = jnp.take_along_axis(logits, label.reshape(-1, 1), axis=-1)[:, 0]
    unweighted = (lse - picked).reshape(batch, seq)
    weight = (jnp.arange(seq)[None, :] < valid_lens[:, None]).astype(jnp.float32)
    ref = (unweighted * weight).sum(axis=1)

    assert loss.shape == (batch,)
    assert jnp.allclose(loss, ref, atol=1e-4, rtol=1e-4), (loss, ref)

    print("KERNEL_OK")
</pallas_src>

<mosaic_0001>
module attributes {stable_mosaic.version = 11 : i64} {
  func.func @_masked_ce_kernel(%arg0: i32, %arg1: memref<2x8x32xf32, #tpu.memory_space<vmem>>, %arg2: memref<2x8xi32, #tpu.memory_space<vmem>>, %arg3: memref<2x1xi32, #tpu.memory_space<vmem>>, %arg4: memref<2x1xf32, #tpu.memory_space<vmem>>) attributes {dimension_semantics = [#tpu.dimension_semantics<parallel>], iteration_bounds = array<i64: 1>, scalar_prefetch = 0 : i64, scratch_operands = 0 : i64, tpu.core_type = #tpu.core_type<tc>, window_params = [{transform_indices = @transform_0, window_bounds = array<i64: 2, 8, 32>}, {transform_indices = @transform_1, window_bounds = array<i64: 2, 8>}, {transform_indices = @transform_2, window_bounds = array<i64: 2, 1>}, {transform_indices = @transform_3, window_bounds = array<i64: 2, 1>}]} {
    %c0 = arith.constant 0 : index
    %c0_0 = arith.constant 0 : index
    %c0_1 = arith.constant 0 : index
    %0 = vector.load %arg1[%c0, %c0_0, %c0_1] : memref<2x8x32xf32, #tpu.memory_space<vmem>>, vector<2x8x32xf32>
    %c0_2 = arith.constant 0 : index
    %c0_3 = arith.constant 0 : index
    %1 = vector.load %arg2[%c0_2, %c0_3] : memref<2x8xi32, #tpu.memory_space<vmem>>, vector<2x8xi32>
    %c0_4 = arith.constant 0 : index
    %c0_5 = arith.constant 0 : index
    %2 = vector.load %arg3[%c0_4, %c0_5] : memref<2x1xi32, #tpu.memory_space<vmem>>, vector<2x1xi32>
    %cst = arith.constant dense<0xFF800000> : vector<2x8xf32>
    %3 = vector.multi_reduction <maximumf>, %0, %cst [2] : vector<2x8x32xf32> to vector<2x8xf32>
    %4 = vector.shape_cast %3 : vector<2x8xf32> to vector<2x8x1xf32>
    %5 = vector.broadcast %4 : vector<2x8x1xf32> to vector<2x8x32xf32>
    %6 = arith.subf %0, %5 : vector<2x8x32xf32>
    %7 = math.exp %6 : vector<2x8x32xf32>
    %cst_6 = arith.constant dense<0.000000e+00> : vector<2x8xf32>
    %8 = vector.multi_reduction <add>, %7, %cst_6 [2] : vector<2x8x32xf32> to vector<2x8xf32>
    %9 = math.log %8 : vector<2x8xf32>
    %10 = vector.shape_cast %4 : vector<2x8x1xf32> to vector<2x8xf32>
    %11 = arith.addf %9, %10 : vector<2x8xf32>
    %12 = tpu.iota {dimensions = array<i32: 2>} : vector<2x8x32xi32>
    %13 = vector.shape_cast %1 : vector<2x8xi32> to vector<2x8x1xi32>
    %14 = vector.broadcast %13 : vector<2x8x1xi32> to vector<2x8x32xi32>
    %15 = arith.cmpi eq, %12, %14 : vector<2x8x32xi32>
    %cst_7 = arith.constant 0.000000e+00 : f32
    %16 = vector.broadcast %cst_7 : f32 to vector<2x8x32xf32>
    %17 = arith.select %15, %0, %16 : vector<2x8x32xi1>, vector<2x8x32xf32>
    %cst_8 = arith.constant dense<0.000000e+00> : vector<2x8xf32>
    %18 = vector.multi_reduction <add>, %17, %cst_8 [2] : vector<2x8x32xf32> to vector<2x8xf32>
    %19 = arith.subf %11, %18 : vector<2x8xf32>
    %20 = tpu.iota {dimensions = array<i32: 1>} : vector<2x8xi32>
    %21 = vector.broadcast %2 : vector<2x1xi32> to vector<2x8xi32>
    %22 = arith.cmpi slt, %20, %21 : vector<2x8xi32>
    %23 = arith.extui %22 : vector<2x8xi1> to vector<2x8xi32>
    %24 = arith.sitofp %23 : vector<2x8xi32> to vector<2x8xf32>
    %25 = arith.mulf %19, %24 : vector<2x8xf32>
    %cst_9 = arith.constant dense<0.000000e+00> : vector<2xf32>
    %26 = vector.multi_reduction <add>, %25, %cst_9 [1] : vector<2x8xf32> to vector<2xf32>
    %27 = vector.shape_cast %26 : vector<2xf32> to vector<2x1xf32>
    %c0_10 = arith.constant 0 : index
    %c0_11 = arith.constant 0 : index
    %28 = vector.load %arg4[%c0_10, %c0_11] : memref<2x1xf32, #tpu.memory_space<vmem>>, vector<2x1xf32>
    tpu.vector_store %arg4[%c0_10, %c0_11], %27 {strides = array<i32>} : memref<2x1xf32, #tpu.memory_space<vmem>>, vector<2x1xf32>,
    return
  }
  func.func @transform_0(%arg0: i32) -> (i32, i32, i32) {
    %c0_i32 = arith.constant 0 : i32
    %c0_i32_0 = arith.constant 0 : i32
    %c0_i32_1 = arith.constant 0 : i32
    return %arg0, %c0_i32, %c0_i32_0 : i32, i32, i32
  }
  func.func @transform_1(%arg0: i32) -> (i32, i32) {
    %c0_i32 = arith.constant 0 : i32
    %c0_i32_0 = arith.constant 0 : i32
    return %arg0, %c0_i32 : i32, i32
  }
  func.func @transform_2(%arg0: i32) -> (i32, i32) {
    %c0_i32 = arith.constant 0 : i32
    %c0_i32_0 = arith.constant 0 : i32
    return %arg0, %c0_i32 : i32, i32
  }
  func.func @transform_3(%arg0: i32) -> (i32, i32) {
    %c0_i32 = arith.constant 0 : i32
    %c0_i32_0 = arith.constant 0 : i32
    return %arg0, %c0_i32 : i32, i32
  }
}

</mosaic_0001>

<bundles_post_ra>
// kernel: tpu_custom_call.1
= control target key start
LH: loop header
LB: loop body
LE: loop exit
PB: predicated region body
PF: predicated region fallthrough
CT: control target
= control target key end

     0   :  { %8 = vsyncpa [#allocation3], 0  ;;  %s178_s12 = smov [#allocation2]   ;;  %s226_s0 = inlined_call_operand.hbm [shape: f32[2,8,32], index: 0, kind: input, shape index: {}]   ;;  %s227_s1 = inlined_call_operand.vmem [shape: s32[2,8], index: 1, kind: input, shape index: {}]   ;;  %s228_s2 = inlined_call_operand.vmem [shape: s32[2,1], index: 2, kind: input, shape index: {}]   ;;  %s229_s3 = inlined_call_operand.vmem [shape: f32[2,1], index: 3, kind: output, shape index: {}]  }
   0x1   :  { %s14_s13 = sshll.u32 %s178_s12, 4  ;;  %s15_s13 = int_to_ptr.vmem [resolvable:$true] %s14_s13 }
   0x2   :  { %s164_s14 = scalar_lea.vmem %s15_s13, 256  ;;  %p169_p1 = scmp.lt.s32.totalorder %s15_s13, %s15_s13 }
   0x3   :  { %p165_p0 = scmp.ne.s32.totalorder %s15_s13, %s164_s14  ;;  %p170_p2 = scmp.lt.s32.totalorder %s164_s14, %s164_s14 }
   0x5   :  { %p171_p3 = por %p170_p2, %p169_p1 }
   0x7   :  { %p172_p4 = pnand %p171_p3, %p165_p0 }
   0x9   :  { %175 = shalt.err (!%p172_p4)
}
   0xa   :  { %s179_s15 = smov 128   ;;  %s180_s16 = smov 8  }
   0xb   :  { %20 = dma.hbm_to_vmem [thread:$0]  %s226_s0, 256, %s15_s13, [#allocation3], %s179_s15, %s179_s15, %s180_s16  }
   0xc   :  { %176 = dma.done.wait [#allocation3], 256  }
   0xd   :  { %177 = vsyncadd [#allocation3], 4294967040  ;;  %v57_v0 = vlaneseq  ;;  %v181_v1 = vmov 0   ;;  %vm32_vm0 = vcmask 261120   ;;  %v28_v5 = vld [vmem:[#allocation2] sm:$0xff]  ;;  %v29_v6 = vld [vmem:[#allocation2 + $0x8] sm:$0xff] }
   0xe   :  { %146 = vset.pattern.permute.xlu0 %v181_v1  ;;  %147 = vset.pattern.permute.xlu1 %v181_v1  ;;  %v30_v7 = vld [vmem:[%s227_s1] sm:$0x3]  ;;  %v33_v8 = vsel %vm32_vm0, %v28_v5, -inf  ;;  %v36_v10 = vsel %vm32_vm0, %v29_v6, -inf  ;;  %v182_v23 = vmov 0.0   ;;  %vm126_vm4 = vcmask 1041409  }
   0xf   :  { %v206_v2 = vshrl.u32 %v57_v0, 7  ;;  %34 = vmax.xlane.f32.xlu0 %v33_v8  ;;  %v31_v12 = vld [vmem:[%s228_s2] sm:$0x3]  ;;  %v58_v13 = vand.u32 127, %v57_v0  ;;  %vm129_vm5 = vcmask 58368   ;;  %vm133_vm6 = vcmask 1024  }
  0x11   :  { %v61_v3 = vsub.s32 0, %v206_v2  ;;  %v68_v4 = vsub.s32 1, %v206_v2  ;;  %v120_v52 = vsub.s32 %v58_v13, %v206_v2 }
  0x13   :  { %v62_v9 = vrot.slane %v30_v7, %v61_v3  ;;  %v69_v11 = vrot.slane %v30_v7, %v68_v4  ;;  %37 = vmax.xlane.f32.xlu0 %v36_v10 }
  0x15   :  { %64 = vbcast.lane.b32.xlu1 %v62_v9, 256 }
  0x19   :  { %71 = vbcast.lane.b32.xlu1 %v69_v11, 256 }
  0x29   :  { %86 = vperm.xlu0 %146, %v31_v12  }
  0x87   :  { %v65_v14 = vpop.permute.xlu1 %64 }
  0x88   :  { %vm73_vm1 = vcmp.eq.s32.totalorder %v58_v13, %v65_v14 }
  0x89   :  { %v75_v15 = vsel %vm73_vm1, %v28_v5, 0.0 }
  0x8a   :  { %v77_v16 = vsel %vm32_vm0, %v75_v15, 0.0 }
  0x8b   :  { %78 = vadd.xlane.f32.xlu1 %v77_v16  ;;  %v72_v17 = vpop.permute.xlu1 %71 }
  0x8c   :  { %vm74_vm2 = vcmp.eq.s32.totalorder %v58_v13, %v72_v17 }
  0x8d   :  { %v76_v18 = vsel %vm74_vm2, %v29_v6, 0.0 }
  0x8e   :  { %v80_v19 = vsel %vm32_vm0, %v76_v18, 0.0 }
  0x8f   :  { %81 = vadd.xlane.f32.xlu0 %v80_v19 }
  0x98   :  { %v35_v20 = vpop.xlane.xlu0 %34 }
  0x99   :  { %v39_v26 = vsub.f32 %v28_v5, %v35_v20 }
  0x9b   :  { %v41_v27 = vmul.f32 1.442695, %v39_v26 }
  0x9c   :  { %v38_v21 = vpop.xlane.xlu0 %37 }
  0x9d   :  { %v40_v28 = vsub.f32 %v29_v6, %v38_v21  ;;  %148 = vpow2.f32 %v41_v27 }
  0x9f   :  { %v43_v29 = vmul.f32 1.442695, %v40_v28 }
  0xa1   :  { %150 = vpow2.f32 %v43_v29 }
  0xa4   :  { %v87_v22 = vpop.permute.xlu0 %86 }
  0xa5   :  { %vm88_vm3 = vcmp.lt.s32.totalorder %v58_v13, %v87_v22 }
  0xa6   :  { %v140_v24 = vsel %vm88_vm3, 1.0, %v182_v23 }
  0xa7   :  { %v95_v25 = vrot.slane %v140_v24, %v61_v3  ;;  %v102_v34 = vrot.slane %v140_v24, %v68_v4 }
  0xa9   :  { %97 = vbcast.lane.b32.xlu1 %v95_v25, 256 }
  0xaa   :  { %v149_v30 = vpop.eup %148 }
  0xab   :  { %v45_v31 = vsel %vm32_vm0, %v149_v30, 0.0 }
  0xae   :  { %v151_v32 = vpop.eup %150 }
  0xaf   :  { %v48_v33 = vsel %vm32_vm0, %v151_v32, 0.0 }
  0xcd   :  { %46 = vadd.xlane.f32.xlu1 %v45_v31 }
  0xd1   :  { %49 = vadd.xlane.f32.xlu1 %v48_v33 }
  0xe2   :  { %104 = vbcast.lane.b32.xlu1 %v102_v34, 256 }
 0x114   :  { %v79_v35 = vpop.xlane.xlu1 %78 }
 0x118   :  { %v82_v45 = vpop.xlane.xlu0 %81 }
 0x11b   :  { %v98_v36 = vpop.permute.xlu1 %97 }
 0x156   :  { %v47_v37 = vpop.xlane.xlu1 %46 }
 0x157   :  { %152 = vlog2.f32 %v47_v37 }
 0x15a   :  { %v50_v38 = vpop.xlane.xlu1 %49 }
 0x15b   :  { %154 = vlog2.f32 %v50_v38 }
 0x15e   :  { %v105_v49 = vpop.permute.xlu1 %104 }
 0x164   :  { %v153_v39 = vpop.eup %152 }
 0x165   :  { %v52_v40 = vmul.f32 0.6931472, %v153_v39 }
 0x167   :  { %v55_v41 = vadd.f32 %v52_v40, %v35_v20 }
 0x168   :  { %v155_v42 = vpop.eup %154 }
 0x169   :  { %v54_v43 = vmul.f32 0.6931472, %v155_v42  ;;  %v83_v44 = vsub.f32 %v55_v41, %v79_v35 }
 0x16b   :  { %v56_v46 = vadd.f32 %v54_v43, %v38_v21  ;;  %v108_v47 = vmul.f32 %v98_v36, %v83_v44 }
 0x16d   :  { %v84_v48 = vsub.f32 %v56_v46, %v82_v45  ;;  %113 = vperm.xlu1 %147, %v108_v47  }
 0x16f   :  { %v109_v50 = vmul.f32 %v105_v49, %v84_v48 }
 0x171   :  { %116 = vperm.xlu1 %147, %v109_v50  }
 0x1e8   :  { %v114_v51 = vpop.permute.xlu1 %113 }
 0x1e9   :  { %v121_v54 = vrot.slane %v114_v51, %v120_v52 }
 0x1ec   :  { %v117_v53 = vpop.permute.xlu1 %116 }
 0x1ed   :  { %v125_v55 = vrot.slane %v117_v53, %v120_v52 }
 0x1ef   :  { %v127_v56 = vsel %vm126_vm4, %v125_v55, %v121_v54 }
 0x1f0   :  { %v130_v57 = vsel %vm129_vm5, %v127_v56, 0.0 }
 0x1f1   :  { %131 = vadd.xlane.f32.xlu1 %v130_v57 }
 0x27a   :  { %v132_v58 = vpop.xlane.xlu1 %131 }
 0x27b   :  { %134 = vst.msk [vmem:[%s229_s3] sm:$0x3] %vm133_vm6, %v132_v58 }
 0x27c   :  { %139 = vsyncpa [#allocation3], 1 }

</bundles_post_ra>
